<compile_context>
chip_gen: v5e
topology: v5e:2x2
jax: 0.10.0
libtpu: 0.0.40
codegen_flags: <defaults>
</compile_context>

<pallas_src>
import numpy as np
import jax
import jax.numpy as jnp
from jax.experimental import pallas as pl
from jax.experimental.pallas import tpu as pltpu

LANES = 128  # packed W2/b2 are zero-padded to a full lane width (single vreg column)


def _round_up(n, m):
    return (n + m - 1) // m * m


def pack_params(w1, b1, w2, b2, lanes=LANES):
    """Pack (W1, b1, W2, b2) into one lane-padded f32 buffer (single DMA).

    Row layout (each section starts on an 8-row / sublane boundary):
      [0, in)                  : W1  (in, hidden)       in cols [0, hidden)
      [off_b1]                 : b1  (hidden,)          in cols [0, hidden)
      [off_w2, off_w2+hidden)  : W2  (hidden, actions)  in cols [0, actions), rest 0
      [off_b2]                 : b2  (actions,)         in cols [0, actions), rest 0
    """
    in_features, hidden = w1.shape
    h2, n_actions = w2.shape
    assert hidden == h2
    assert hidden <= lanes and n_actions <= lanes
    off_b1 = _round_up(in_features, 8)
    off_w2 = off_b1 + 8
    off_b2 = off_w2 + _round_up(hidden, 8)
    rows = off_b2 + 8
    p = jnp.zeros((rows, lanes), jnp.float32)
    p = p.at[0:in_features, 0:hidden].set(w1)
    p = p.at[off_b1, 0:hidden].set(b1.reshape(-1))
    p = p.at[off_w2:off_w2 + hidden, 0:n_actions].set(w2)
    p = p.at[off_b2, 0:n_actions].set(b2.reshape(-1))
    meta = dict(in_features=in_features, hidden=hidden, n_actions=n_actions,
                off_b1=off_b1, off_w2=off_w2, off_b2=off_b2)
    return p, meta


def _make_kernel(meta):
    in_f = meta["in_features"]
    hid = meta["hidden"]
    n_act = meta["n_actions"]
    off_b1, off_w2, off_b2 = meta["off_b1"], meta["off_w2"], meta["off_b2"]

    def kernel(x_ref, p_ref, q_ref, a_ref):
        x = x_ref[...]                                  # (TB, in)
        w1 = p_ref[0:in_f, 0:hid]                       # (in, hidden)
        b1 = p_ref[off_b1:off_b1 + 1, 0:hid]            # (1, hidden)
        w2 = p_ref[off_w2:off_w2 + hid, :]              # (hidden, 128), zero-padded cols
        b2 = p_ref[off_b2:off_b2 + 1, :]                # (1, 128), zero-padded cols

        # hidden = tanh(x @ W1 + b1)       (MXU matmul, tanh on EUP)
        h = jnp.tanh(jnp.dot(x, w1, preferred_element_type=jnp.float32) + b1)
        # q over the full 128-lane padded W2 (one MXU pass; padded lanes are 0+0).
        q = jnp.dot(h, w2, preferred_element_type=jnp.float32) + b2     # (TB, 128)
        # Store only the real action columns -> (B, n_actions) output, no slice after.
        q_ref[...] = q[:, :n_act].astype(q_ref.dtype)

        # Fused greedy action: argmax over the first n_act lanes (rest masked -inf).
        lane = jax.lax.broadcasted_iota(jnp.int32, q.shape, 1)
        qm = jnp.where(lane < n_act, q, -jnp.inf)
        row_max = jnp.max(qm, axis=-1, keepdims=True)
        idx = jnp.where(qm >= row_max, lane, LANES)     # int32 ops; first-max index
        a_ref[...] = jnp.min(idx, axis=-1, keepdims=True).astype(jnp.int32)

    return kernel


def mlp_network_forward(x, packed, meta, *, block_rows=512):
    """Batched Pallas forward. Returns (q[B, n_actions] f32, greedy_action[B] i32)."""
    B, in_features = x.shape
    assert in_features == meta["in_features"]
    n_actions = meta["n_actions"]

    # Batch tile: sublane multiple, no larger than the (padded) batch.
    tb = _round_up(min(block_rows, max(B, 1)), 8)
    b_pad = _round_up(B, tb)
    x_p = jnp.pad(x, ((0, b_pad - B), (0, 0))) if b_pad != B else x
    grid = (b_pad // tb,)

    q, act = pl.pallas_call(
        _make_kernel(meta),
        out_shape=(jax.ShapeDtypeStruct((b_pad, n_actions), jnp.float32),
                   jax.ShapeDtypeStruct((b_pad, 1), jnp.int32)),
        grid=grid,
        in_specs=[
            pl.BlockSpec((tb, in_features), lambda i: (i, 0)),  # batch tile of x
            pl.BlockSpec(packed.shape, lambda i: (0, 0)),       # params: constant block -> VMEM-resident
        ],
        out_specs=(
            pl.BlockSpec((tb, n_actions), lambda i: (i, 0)),    # q values
            pl.BlockSpec((tb, 1), lambda i: (i, 0)),            # fused argmax actions
        ),
        compiler_params=pltpu.CompilerParams(
            dimension_semantics=("parallel",)),                 # megacore split on v7x
    )(x_p, packed)

    if b_pad != B:
        q, act = q[:B], act[:B]
    return q, act[:, 0]


def mlp_network_act(obs, packed, meta):
    """Equivalent of mlp_network.act: greedy action for a single observation."""
    obs_t = jnp.asarray(obs, jnp.float32).reshape(1, -1)
    _, action = mlp_network_forward(obs_t, packed, meta)
    return int(action[0])


def init_params(key, in_features, hidden1, hidden2, n_actions):
    """PyTorch-style Linear init: U(-1/sqrt(fan_in), 1/sqrt(fan_in)).

    The module chains Linear(in, h1) -> Tanh -> Linear(h2, n_actions); this only
    type-checks when h1 == h2 (as in the original training script).
    """
    assert hidden1 == hidden2, "mlp_network forward requires hiddenDim_1 == hiddenDim_2"
    k1, k2, k3, k4 = jax.random.split(key, 4)
    bound1 = 1.0 / np.sqrt(in_features)
    bound2 = 1.0 / np.sqrt(hidden2)
    # Weights stored as [in, out] (transpose of PyTorch's [out, in]).
    w1 = jax.random.uniform(k1, (in_features, hidden1), jnp.float32, -bound1, bound1)
    b1 = jax.random.uniform(k2, (hidden1,), jnp.float32, -bound1, bound1)
    w2 = jax.random.uniform(k3, (hidden2, n_actions), jnp.float32, -bound2, bound2)
    b2 = jax.random.uniform(k4, (n_actions,), jnp.float32, -bound2, bound2)
    return w1, b1, w2, b2


if __name__ == "__main__":
    in_features = 8      # int(np.prod(env.observation_space[0].shape))
    hidden1 = hidden2 = 32
    n_actions = 4        # env.action_space.n
    batch = 64           # small replay-buffer batch

    key = jax.random.PRNGKey(0)
    kx, kp = jax.random.split(key)
    x = jax.random.normal(kx, (batch, in_features), jnp.float32)
    w1, b1, w2, b2 = init_params(kp, in_features, hidden1, hidden2, n_actions)
    packed, meta = pack_params(w1, b1, w2, b2)

    # Jitted batched forward (meta captured statically in the closure).
    fwd = jax.jit(lambda xb, p: mlp_network_forward(xb, p, meta))
    q, actions = jax.block_until_ready(fwd(x, packed))

    # Pure-JAX reference of the same forward pass.
    ref_q = jnp.tanh(x @ w1 + b1) @ w2 + b2
    np.testing.assert_allclose(np.asarray(q), np.asarray(ref_q), rtol=1e-5, atol=1e-5)
    np.testing.assert_array_equal(np.asarray(actions),
                                  np.asarray(jnp.argmax(ref_q, axis=1)))

    # Ragged batch: exercises the row-padding (+ slice) path.
    q5, a5 = jax.block_until_ready(mlp_network_forward(x[:5], packed, meta))
    np.testing.assert_allclose(np.asarray(q5), np.asarray(ref_q[:5]), rtol=1e-5, atol=1e-5)
    np.testing.assert_array_equal(np.asarray(a5),
                                  np.asarray(jnp.argmax(ref_q[:5], axis=1)))

    # `act` path: single observation (batch padded to a sublane multiple internally).
    a = mlp_network_act(np.asarray(x[0]), packed, meta)
    assert a == int(jnp.argmax(ref_q[0]))

    print("KERNEL_OK")
</pallas_src>

<mosaic_0001>
module attributes {stable_mosaic.version = 11 : i64} {
  func.func @kernel(%arg0: i32, %arg1: memref<64x8xf32, #tpu.memory_space<vmem>>, %arg2: memref<56x128xf32, #tpu.memory_space<vmem>>, %arg3: memref<64x4xf32, #tpu.memory_space<vmem>>, %arg4: memref<64x1xi32, #tpu.memory_space<vmem>>) attributes {dimension_semantics = [#tpu.dimension_semantics<parallel>], iteration_bounds = array<i64: 1>, scalar_prefetch = 0 : i64, scratch_operands = 0 : i64, tpu.core_type = #tpu.core_type<tc>, window_params = [{transform_indices = @transform_0, window_bounds = array<i64: 64, 8>}, {pipeline_mode = #tpu.pipeline_mode<synchronous>, transform_indices = @transform_1, window_bounds = array<i64: 56, 128>}, {transform_indices = @transform_2, window_bounds = array<i64: 64, 4>}, {transform_indices = @transform_3, window_bounds = array<i64: 64, 1>}]} {
    %c0 = arith.constant 0 : index
    %c0_0 = arith.constant 0 : index
    %0 = vector.load %arg1[%c0, %c0_0] : memref<64x8xf32, #tpu.memory_space<vmem>>, vector<64x8xf32>
    %c0_1 = arith.constant 0 : index
    %c0_2 = arith.constant 0 : index
    %1 = vector.load %arg2[%c0_1, %c0_2] : memref<56x128xf32, #tpu.memory_space<vmem>>, vector<8x32xf32>
    %c8 = arith.constant 8 : index
    %c0_3 = arith.constant 0 : index
    %2 = vector.load %arg2[%c8, %c0_3] : memref<56x128xf32, #tpu.memory_space<vmem>>, vector<1x32xf32>
    %c16 = arith.constant 16 : index
    %c0_4 = arith.constant 0 : index
    %3 = vector.load %arg2[%c16, %c0_4] : memref<56x128xf32, #tpu.memory_space<vmem>>, vector<32x128xf32>
    %c48 = arith.constant 48 : index
    %c0_5 = arith.constant 0 : index
    %4 = vector.load %arg2[%c48, %c0_5] : memref<56x128xf32, #tpu.memory_space<vmem>>, vector<1x128xf32>
    %cst = arith.constant dense<0.000000e+00> : vector<64x32xf32>
    %5 = tpu.matmul %0, %1, %cst {dimension_numbers = #tpu.dot_dimension_numbers<[1], [0], [0], [1], [0, 0, 1, 1], [], []>} : vector<64x8xf32>, vector<8x32xf32>, vector<64x32xf32> -> vector<64x32xf32>
    %6 = vector.broadcast %2 : vector<1x32xf32> to vector<64x32xf32>
    %7 = arith.addf %5, %6 : vector<64x32xf32>
    %8 = math.tanh %7 : vector<64x32xf32>
    %cst_6 = arith.constant dense<0.000000e+00> : vector<64x128xf32>
    %9 = tpu.matmul %8, %3, %cst_6 {dimension_numbers = #tpu.dot_dimension_numbers<[1], [0], [0], [1], [0, 0, 1, 1], [], []>} : vector<64x32xf32>, vector<32x128xf32>, vector<64x128xf32> -> vector<64x128xf32>
    %10 = vector.broadcast %4 : vector<1x128xf32> to vector<64x128xf32>
    %11 = arith.addf %9, %10 : vector<64x128xf32>
    %12 = vector.extract_strided_slice %11 {offsets = [0, 0], sizes = [64, 4], strides = [1, 1]} : vector<64x128xf32> to vector<64x4xf32>
    %c0_7 = arith.constant 0 : index
    %c0_8 = arith.constant 0 : index
    %13 = vector.load %arg3[%c0_7, %c0_8] : memref<64x4xf32, #tpu.memory_space<vmem>>, vector<64x4xf32>
    tpu.vector_store %arg3[%c0_7, %c0_8], %12 {strides = array<i32>} : memref<64x4xf32, #tpu.memory_space<vmem>>, vector<64x4xf32>,
    %14 = tpu.iota {dimensions = array<i32: 1>} : vector<64x128xi32>
    %c4_i32 = arith.constant 4 : i32
    %15 = vector.broadcast %c4_i32 : i32 to vector<64x128xi32>
    %16 = arith.cmpi slt, %14, %15 : vector<64x128xi32>
    %cst_9 = arith.constant 0xFF800000 : f32
    %17 = vector.broadcast %cst_9 : f32 to vector<64x128xf32>
    %18 = arith.select %16, %11, %17 : vector<64x128xi1>, vector<64x128xf32>
    %cst_10 = arith.constant dense<0xFF800000> : vector<64xf32>
    %19 = vector.multi_reduction <maximumf>, %18, %cst_10 [1] : vector<64x128xf32> to vector<64xf32>
    %20 = vector.shape_cast %19 : vector<64xf32> to vector<64x1xf32>
    %21 = vector.broadcast %20 : vector<64x1xf32> to vector<64x128xf32>
    %22 = arith.cmpf oge, %18, %21 : vector<64x128xf32>
    %c128_i32 = arith.constant 128 : i32
    %23 = vector.broadcast %c128_i32 : i32 to vector<64x128xi32>
    %24 = arith.select %22, %14, %23 : vector<64x128xi1>, vector<64x128xi32>
    %cst_11 = arith.constant dense<2147483647> : vector<64xi32>
    %25 = vector.multi_reduction <minsi>, %24, %cst_11 [1] : vector<64x128xi32> to vector<64xi32>
    %26 = vector.shape_cast %25 : vector<64xi32> to vector<64x1xi32>
    %c0_12 = arith.constant 0 : index
    %c0_13 = arith.constant 0 : index
    %27 = vector.load %arg4[%c0_12, %c0_13] : memref<64x1xi32, #tpu.memory_space<vmem>>, vector<64x1xi32>
    tpu.vector_store %arg4[%c0_12, %c0_13], %26 {strides = array<i32>} : memref<64x1xi32, #tpu.memory_space<vmem>>, vector<64x1xi32>,
    return
  }
  func.func @transform_0(%arg0: i32) -> (i32, i32) {
    %c0_i32 = arith.constant 0 : i32
    %c0_i32_0 = arith.constant 0 : i32
    return %arg0, %c0_i32 : i32, i32
  }
  func.func @transform_1(%arg0: i32) -> (i32, i32) {
    %c0_i32 = arith.constant 0 : i32
    %c0_i32_0 = arith.constant 0 : i32
    %c0_i32_1 = arith.constant 0 : i32
    return %c0_i32, %c0_i32_0 : i32, i32
  }
  func.func @transform_2(%arg0: i32) -> (i32, i32) {
    %c0_i32 = arith.constant 0 : i32
    %c0_i32_0 = arith.constant 0 : i32
    return %arg0, %c0_i32 : i32, i32
  }
  func.func @transform_3(%arg0: i32) -> (i32, i32) {
    %c0_i32 = arith.constant 0 : i32
    %c0_i32_0 = arith.constant 0 : i32
    return %arg0, %c0_i32 : i32, i32
  }
}

</mosaic_0001>

<bundles_post_ra>
// kernel: _lambda_.1
= control target key start
LH: loop header
LB: loop body
LE: loop exit
PB: predicated region body
PF: predicated region fallthrough
CT: control target
= control target key end

     0   :  { %vm29_vm0 = vcmask 64512   ;;  %vm104_vm1 = vcmask 261120   ;;  %v179_v38 = vlaneseq  ;;  %vm170_vm2 = vcmask 31744   ;;  %s562_s1 = inlined_call_operand.vmem [shape: f32[56,128], index: 1, kind: input, shape index: {}]   ;;  %s563_s0 = inlined_call_operand.vmem [shape: f32[64,8], index: 0, kind: input, shape index: {}]   ;;  %s564_s2 = inlined_call_operand.vmem [shape: f32[64,4], index: 2, kind: output, shape index: {0}]   ;;  %s565_s3 = inlined_call_operand.vmem [shape: s32[64,1], index: 3, kind: output, shape index: {1}]  }
   0x1   :  { %v21_v0 = vld [vmem:[%s562_s1] sm:$0xff]  ;;  %v18_v2 = vld [vmem:[%s563_s0 + $0x28] sm:$0xff]  ;;  %v19_v4 = vld [vmem:[%s563_s0 + $0x30] sm:$0xff] }
   0x2   :  { %69 = vmatpush.msra.mxu0 %v21_v0  ;;  %v13_v1 = vld [vmem:[%s563_s0] sm:$0xff]  ;;  %367 = vmatpush.msra.mxu3 %v21_v0  ;;  %v14_v3 = vld [vmem:[%s563_s0 + $0x8] sm:$0xff]  ;;  %v15_v5 = vld [vmem:[%s563_s0 + $0x10] sm:$0xff]  ;;  %v468_v39 = vand.u32 127, %v179_v38 }
   0x3   :  { %351 = vmatmul.msk.f32.vlgmr.msra.gmra.mxu0 %vm29_vm0, %v13_v1  ;;  %356 = vmatmul.msk.f32.vlgmr.msra.gmra.mxu3 %vm29_vm0, %v18_v2  ;;  %v20_v6 = vld [vmem:[%s563_s0 + $0x38] sm:$0xff]  ;;  %v17_v8 = vld [vmem:[%s563_s0 + $0x20] sm:$0xff]  ;;  %v26_v9 = vld [vmem:[%s562_s1 + $0x28] sm:$0xff] }
   0x4   :  { %v16_v7 = vld [vmem:[%s563_s0 + $0x18] sm:$0xff]  ;;  %141 = vmatpush.msra.mxu1 %v26_v9  ;;  %v25_v10 = vld [vmem:[%s562_s1 + $0x20] sm:$0xff]  ;;  %368 = vmatpush.msra.mxu2 %v26_v9  ;;  %v23_v12 = vld [vmem:[%s562_s1 + $0x10] sm:$0xff]  ;;  %vm181_vm3 = vcmp.lt.s32.totalorder %v468_v39, 4 }
   0x5   :  { %v24_v11 = vld [vmem:[%s562_s1 + $0x18] sm:$0xff]  ;;  %v372_v13 = vld [vmem:[%s562_s1 + $0x8] ss:$0 sm:$0xff]  ;;  %v373_v40 = vld [vmem:[%s562_s1 + $0x30] ss:$0 sm:$0xff] }
   0x6   :  { %142 = vmatpush.msra.mxu1 %v25_v10  ;;  %369 = vmatpush.msra.mxu2 %v25_v10 }
   0x8   :  { %143 = vmatpush.msra.mxu1 %v24_v11  ;;  %370 = vmatpush.msra.mxu2 %v24_v11 }
   0xa   :  { %144 = vmatpush.msra.mxu1 %v23_v12  ;;  %371 = vmatpush.msra.mxu2 %v23_v12 }
   0xb   :  { %352 = vmatmul.msk.f32.gmra.mxu0 %vm29_vm0, %v14_v3  ;;  %357 = vmatmul.msk.f32.gmra.mxu3 %vm29_vm0, %v19_v4 }
  0x13   :  { %353 = vmatmul.msk.f32.gmra.mxu0 %vm29_vm0, %v15_v5  ;;  %358 = vmatmul.msk.f32.gmra.mxu3 %vm29_vm0, %v20_v6 }
  0x1b   :  { %354 = vmatmul.msk.f32.gmra.mxu0 %vm29_vm0, %v16_v7 }
  0x23   :  { %355 = vmatmul.msk.f32.gmra.mxu0 %vm29_vm0, %v17_v8 }
  0x80   :  { %v71_v14 = vpop.f32.mrf.mxu0 }
  0x81   :  { %v72_v15 = vadd.f32 %v372_v13, %v71_v14 }
  0x83   :  { %374 = vtanh.f32 %v72_v15 }
  0x86   :  { %v86_v25 = vpop.f32.mrf.mxu3 }
  0x87   :  { %v87_v29 = vadd.f32 %v372_v13, %v86_v25 }
  0x88   :  { %v74_v16 = vpop.f32.mrf.mxu0 }
  0x89   :  { %v375_v17 = vpop.eup %374  ;;  %v75_v18 = vadd.f32 %v372_v13, %v74_v16 }
  0x8a   :  { %359 = vmatmul.msk.f32.vlgmr.msra.gmra.mxu1 %vm104_vm1, %v375_v17 }
  0x8b   :  { %376 = vtanh.f32 %v75_v18 }
  0x8e   :  { %v89_v30 = vpop.f32.mrf.mxu3 }
  0x8f   :  { %v90_v32 = vadd.f32 %v372_v13, %v89_v30 }
  0x90   :  { %v77_v19 = vpop.f32.mrf.mxu0 }
  0x91   :  { %v377_v20 = vpop.eup %376  ;;  %v78_v21 = vadd.f32 %v372_v13, %v77_v19 }
  0x92   :  { %360 = vmatmul.msk.f32.gmra.mxu1 %vm104_vm1, %v377_v20 }
  0x93   :  { %378 = vtanh.f32 %v78_v21 }
  0x96   :  { %v92_v34 = vpop.f32.mrf.mxu3 }
  0x97   :  { %v93_v35 = vadd.f32 %v372_v13, %v92_v34 }
  0x98   :  { %v80_v22 = vpop.f32.mrf.mxu0 }
  0x99   :  { %v379_v23 = vpop.eup %378  ;;  %v81_v24 = vadd.f32 %v372_v13, %v80_v22 }
  0x9a   :  { %361 = vmatmul.msk.f32.gmra.mxu1 %vm104_vm1, %v379_v23 }
  0x9b   :  { %380 = vtanh.f32 %v81_v24 }
  0xa0   :  { %v83_v26 = vpop.f32.mrf.mxu0 }
  0xa1   :  { %v381_v27 = vpop.eup %380  ;;  %v84_v28 = vadd.f32 %v372_v13, %v83_v26 }
  0xa2   :  { %362 = vmatmul.msk.f32.gmra.mxu1 %vm104_vm1, %v381_v27 }
  0xa3   :  { %382 = vtanh.f32 %v84_v28 }
  0xa4   :  { %384 = vtanh.f32 %v87_v29 }
  0xa5   :  { %386 = vtanh.f32 %v90_v32 }
  0xa6   :  { %388 = vtanh.f32 %v93_v35 }
  0xa9   :  { %v383_v31 = vpop.eup %382 }
  0xaa   :  { %363 = vmatmul.msk.f32.vlgmr.msra.gmra.mxu2 %vm104_vm1, %v383_v31  ;;  %v385_v33 = vpop.eup %384 }
  0xab   :  { %v387_v36 = vpop.eup %386 }
  0xac   :  { %v389_v37 = vpop.eup %388 }
  0xb2   :  { %364 = vmatmul.msk.f32.gmra.mxu2 %vm104_vm1, %v385_v33 }
  0xba   :  { %365 = vmatmul.msk.f32.gmra.mxu2 %vm104_vm1, %v387_v36 }
  0xc2   :  { %366 = vmatmul.msk.f32.gmra.mxu2 %vm104_vm1, %v389_v37 }
 0x107   :  { %v146_v41 = vpop.f32.mrf.mxu1 }
 0x108   :  { %v147_v42 = vadd.f32 %v373_v40, %v146_v41 }
 0x10a   :  { %171 = vst.msk [vmem:[%s564_s2] sm:$0xff] %vm170_vm2, %v147_v42  ;;  %v182_v43 = vsel %vm181_vm3, %v147_v42, -inf }
 0x10b   :  { %190 = vmax.xlane.f32.xlu0 %v182_v43 }
 0x10f   :  { %v149_v44 = vpop.f32.mrf.mxu1 }
 0x110   :  { %v150_v45 = vadd.f32 %v373_v40, %v149_v44 }
 0x112   :  { %172 = vst.msk [vmem:[%s564_s2 + $0x8] sm:$0xff] %vm170_vm2, %v150_v45  ;;  %v183_v46 = vsel %vm181_vm3, %v150_v45, -inf }
 0x113   :  { %192 = vmax.xlane.f32.xlu0 %v183_v46 }
 0x117   :  { %v152_v47 = vpop.f32.mrf.mxu1 }
 0x118   :  { %v153_v48 = vadd.f32 %v373_v40, %v152_v47 }
 0x11a   :  { %173 = vst.msk [vmem:[%s564_s2 + $0x10] sm:$0xff] %vm170_vm2, %v153_v48  ;;  %v184_v49 = vsel %vm181_vm3, %v153_v48, -inf }
 0x11b   :  { %194 = vmax.xlane.f32.xlu1 %v184_v49 }
 0x11f   :  { %v155_v50 = vpop.f32.mrf.mxu1 }
 0x120   :  { %v156_v51 = vadd.f32 %v373_v40, %v155_v50 }
 0x122   :  { %174 = vst.msk [vmem:[%s564_s2 + $0x18] sm:$0xff] %vm170_vm2, %v156_v51  ;;  %v185_v52 = vsel %vm181_vm3, %v156_v51, -inf }
 0x123   :  { %196 = vmax.xlane.f32.xlu1 %v185_v52 }
 0x12d   :  { %v158_v53 = vpop.f32.mrf.mxu2 }
 0x12e   :  { %v159_v54 = vadd.f32 %v373_v40, %v158_v53 }
 0x130   :  { %175 = vst.msk [vmem:[%s564_s2 + $0x20] sm:$0xff] %vm170_vm2, %v159_v54  ;;  %v186_v55 = vsel %vm181_vm3, %v159_v54, -inf }
 0x131   :  { %198 = vmax.xlane.f32.xlu2 %v186_v55 }
 0x135   :  { %v161_v56 = vpop.f32.mrf.mxu2 }
 0x136   :  { %v162_v57 = vadd.f32 %v373_v40, %v161_v56 }
 0x138   :  { %176 = vst.msk [vmem:[%s564_s2 + $0x28] sm:$0xff] %vm170_vm2, %v162_v57  ;;  %v187_v58 = vsel %vm181_vm3, %v162_v57, -inf }
 0x139   :  { %200 = vmax.xlane.f32.xlu2 %v187_v58 }
 0x13d   :  { %v164_v59 = vpop.f32.mrf.mxu2 }
 0x13e   :  { %v165_v60 = vadd.f32 %v373_v40, %v164_v59 }
 0x140   :  { %177 = vst.msk [vmem:[%s564_s2 + $0x30] sm:$0xff] %vm170_vm2, %v165_v60  ;;  %v188_v61 = vsel %vm181_vm3, %v165_v60, -inf }
 0x141   :  { %202 = vmax.xlane.f32.xlu0 %v188_v61 }
 0x145   :  { %v167_v62 = vpop.f32.mrf.mxu2 }
 0x146   :  { %v168_v63 = vadd.f32 %v373_v40, %v167_v62 }
 0x148   :  { %178 = vst.msk [vmem:[%s564_s2 + $0x38] sm:$0xff] %vm170_vm2, %v168_v63  ;;  %v189_v0 = vsel %vm181_vm3, %v168_v63, -inf }
 0x149   :  { %204 = vmax.xlane.f32.xlu1 %v189_v0 }
 0x17e   :  { %v191_v1 = vpop.xlane.xlu0 %190 }
 0x17f   :  { %vm206_vm4 = vcmp.ge.f32.partialorder %v182_v43, %v191_v1 }
 0x180   :  { %v214_v2 = vsel %vm206_vm4, %v468_v39, 128  ;;  %vm334_vm4 = vcmask 7168  }
 0x181   :  { %v223_v3 = vshra.s32 %v214_v2, 16  ;;  %v222_v33 = vand.u32 65535, %v214_v2 }
 0x183   :  { %v225_v4 = vcvt.s32.f32 %v223_v3  ;;  %v224_v35 = vcvt.s32.f32 %v222_v33 }
 0x185   :  { %226 = vmin.xlane.f32.xlu2 %v225_v4 }
 0x186   :  { %v193_v5 = vpop.xlane.xlu0 %192 }
 0x187   :  { %vm207_vm5 = vcmp.ge.f32.partialorder %v183_v46, %v193_v5 }
 0x188   :  { %v215_v6 = vsel %vm207_vm5, %v468_v39, 128 }
 0x189   :  { %v237_v7 = vshra.s32 %v215_v6, 16  ;;  %v236_v37 = vand.u32 65535, %v215_v6 }
 0x18b   :  { %v239_v8 = vcvt.s32.f32 %v237_v7  ;;  %v238_v40 = vcvt.s32.f32 %v236_v37 }
 0x18d   :  { %240 = vmin.xlane.f32.xlu0 %v239_v8 }
 0x18e   :  { %v195_v9 = vpop.xlane.xlu1 %194 }
 0x18f   :  { %vm208_vm6 = vcmp.ge.f32.partialorder %v184_v49, %v195_v9 }
 0x190   :  { %v216_v10 = vsel %vm208_vm6, %v468_v39, 128 }
 0x191   :  { %v251_v11 = vshra.s32 %v216_v10, 16  ;;  %v250_v42 = vand.u32 65535, %v216_v10 }
 0x193   :  { %v253_v12 = vcvt.s32.f32 %v251_v11  ;;  %v252_v44 = vcvt.s32.f32 %v250_v42 }
 0x195   :  { %254 = vmin.xlane.f32.xlu1 %v253_v12 }
 0x196   :  { %v197_v13 = vpop.xlane.xlu1 %196 }
 0x197   :  { %vm209_vm7 = vcmp.ge.f32.partialorder %v185_v52, %v197_v13 }
 0x198   :  { %v217_v14 = vsel %vm209_vm7, %v468_v39, 128 }
 0x199   :  { %v265_v15 = vshra.s32 %v217_v14, 16  ;;  %v264_v45 = vand.u32 65535, %v217_v14 }
 0x19b   :  { %v267_v16 = vcvt.s32.f32 %v265_v15  ;;  %v266_v47 = vcvt.s32.f32 %v264_v45 }
 0x19d   :  { %268 = vmin.xlane.f32.xlu2 %v267_v16 }
 0x1a4   :  { %v199_v17 = vpop.xlane.xlu2 %198 }
 0x1a5   :  { %vm210_vm8 = vcmp.ge.f32.partialorder %v186_v55, %v199_v17 }
 0x1a6   :  { %v218_v18 = vsel %vm210_vm8, %v468_v39, 128 }
 0x1a7   :  { %v279_v19 = vshra.s32 %v218_v18, 16  ;;  %v278_v49 = vand.u32 65535, %v218_v18 }
 0x1a9   :  { %v281_v20 = vcvt.s32.f32 %v279_v19  ;;  %v280_v51 = vcvt.s32.f32 %v278_v49 }
 0x1ab   :  { %282 = vmin.xlane.f32.xlu0 %v281_v20 }
 0x1ac   :  { %v201_v21 = vpop.xlane.xlu2 %200 }
 0x1ad   :  { %vm211_vm9 = vcmp.ge.f32.partialorder %v187_v58, %v201_v21 }
 0x1ae   :  { %v219_v22 = vsel %vm211_vm9, %v468_v39, 128 }
 0x1af   :  { %v293_v23 = vshra.s32 %v219_v22, 16  ;;  %v292_v53 = vand.u32 65535, %v219_v22 }
 0x1b1   :  { %v295_v24 = vcvt.s32.f32 %v293_v23  ;;  %v294_v55 = vcvt.s32.f32 %v292_v53 }
 0x1b3   :  { %296 = vmin.xlane.f32.xlu1 %v295_v24 }
 0x1b4   :  { %v203_v25 = vpop.xlane.xlu0 %202 }
 0x1b5   :  { %vm212_vm10 = vcmp.ge.f32.partialorder %v188_v61, %v203_v25 }
 0x1b6   :  { %v220_v26 = vsel %vm212_vm10, %v468_v39, 128 }
 0x1b7   :  { %v307_v27 = vshra.s32 %v220_v26, 16  ;;  %v306_v57 = vand.u32 65535, %v220_v26 }
 0x1b9   :  { %v309_v28 = vcvt.s32.f32 %v307_v27  ;;  %v308_v59 = vcvt.s32.f32 %v306_v57 }
 0x1bb   :  { %310 = vmin.xlane.f32.xlu2 %v309_v28 }
 0x1bc   :  { %v205_v29 = vpop.xlane.xlu1 %204 }
 0x1bd   :  { %vm213_vm11 = vcmp.ge.f32.partialorder %v189_v0, %v205_v29 }
 0x1be   :  { %v221_v30 = vsel %vm213_vm11, %v468_v39, 128 }
 0x1bf   :  { %v321_v31 = vshra.s32 %v221_v30, 16  ;;  %v320_v61 = vand.u32 65535, %v221_v30 }
 0x1c1   :  { %v323_v32 = vcvt.s32.f32 %v321_v31  ;;  %v322_v63 = vcvt.s32.f32 %v320_v61 }
 0x1c3   :  { %324 = vmin.xlane.f32.xlu0 %v323_v32 }
 0x1f8   :  { %v227_v34 = vpop.xlane.xlu2 %226 }
 0x1f9   :  { %vm228_vm12 = vcmp.eq.f32.partialorder %v225_v4, %v227_v34  ;;  %v233_v1 = vcvt.f32.s32 %v227_v34 }
 0x1fa   :  { %v229_v36 = vsel %vm228_vm12, %v224_v35, inf }
 0x1fb   :  { %230 = vmin.xlane.f32.xlu1 %v229_v36  ;;  %v234_v3 = vshll.u32 %v233_v1, 16 }
 0x200   :  { %v241_v38 = vpop.xlane.xlu0 %240 }
 0x201   :  { %vm242_vm13 = vcmp.eq.f32.partialorder %v239_v8, %v241_v38  ;;  %v247_v6 = vcvt.f32.s32 %v241_v38 }
 0x202   :  { %v243_v41 = vsel %vm242_vm13, %v238_v40, inf }
 0x203   :  { %244 = vmin.xlane.f32.xlu2 %v243_v41  ;;  %v248_v8 = vshll.u32 %v247_v6, 16 }
 0x208   :  { %v255_v43 = vpop.xlane.xlu1 %254 }
 0x209   :  { %vm256_vm14 = vcmp.eq.f32.partialorder %v253_v12, %v255_v43  ;;  %v261_v11 = vcvt.f32.s32 %v255_v43 }
 0x20a   :  { %v257_v39 = vsel %vm256_vm14, %v252_v44, inf }
 0x20b   :  { %258 = vmin.xlane.f32.xlu0 %v257_v39  ;;  %v262_v13 = vshll.u32 %v261_v11, 16 }
 0x210   :  { %v269_v46 = vpop.xlane.xlu2 %268 }
 0x211   :  { %vm270_vm15 = vcmp.eq.f32.partialorder %v267_v16, %v269_v46  ;;  %v275_v16 = vcvt.f32.s32 %v269_v46 }
 0x212   :  { %v271_v48 = vsel %vm270_vm15, %v266_v47, inf }
 0x213   :  { %272 = vmin.xlane.f32.xlu1 %v271_v48  ;;  %v276_v18 = vshll.u32 %v275_v16, 16 }
 0x21e   :  { %v283_v50 = vpop.xlane.xlu0 %282 }
 0x21f   :  { %vm284_vm0 = vcmp.eq.f32.partialorder %v281_v20, %v283_v50  ;;  %v289_v21 = vcvt.f32.s32 %v283_v50 }
 0x220   :  { %v285_v52 = vsel %vm284_vm0, %v280_v51, inf }
 0x221   :  { %286 = vmin.xlane.f32.xlu2 %v285_v52  ;;  %v290_v23 = vshll.u32 %v289_v21, 16 }
 0x226   :  { %v297_v54 = vpop.xlane.xlu1 %296 }
 0x227   :  { %vm298_vm1 = vcmp.eq.f32.partialorder %v295_v24, %v297_v54  ;;  %v303_v26 = vcvt.f32.s32 %v297_v54 }
 0x228   :  { %v299_v56 = vsel %vm298_vm1, %v294_v55, inf }
 0x229   :  { %300 = vmin.xlane.f32.xlu0 %v299_v56 }
 0x22e   :  { %v311_v58 = vpop.xlane.xlu2 %310 }
 0x22f   :  { %vm312_vm2 = vcmp.eq.f32.partialorder %v309_v28, %v311_v58  ;;  %v304_v28 = vshll.u32 %v303_v26, 16  ;;  %v317_v31 = vcvt.f32.s32 %v311_v58 }
 0x230   :  { %v313_v60 = vsel %vm312_vm2, %v308_v59, inf }
 0x231   :  { %314 = vmin.xlane.f32.xlu1 %v313_v60  ;;  %v318_v33 = vshll.u32 %v317_v31, 16 }
 0x236   :  { %v325_v62 = vpop.xlane.xlu0 %324 }
 0x237   :  { %vm326_vm3 = vcmp.eq.f32.partialorder %v323_v32, %v325_v62  ;;  %v331_v36 = vcvt.f32.s32 %v325_v62 }
 0x238   :  { %v327_v0 = vsel %vm326_vm3, %v322_v63, inf }
 0x239   :  { %328 = vmin.xlane.f32.xlu2 %v327_v0  ;;  %v332_v38 = vshll.u32 %v331_v36, 16 }
 0x26e   :  { %v231_v2 = vpop.xlane.xlu1 %230 }
 0x26f   :  { %v232_v4 = vcvt.f32.s32 %v231_v2 }
 0x271   :  { %v235_v5 = vadd.s32 %v234_v3, %v232_v4 }
 0x273   :  { %335 = vst.msk [vmem:[%s565_s3] sm:$0xff] %vm334_vm4, %v235_v5 }
 0x276   :  { %v245_v7 = vpop.xlane.xlu2 %244 }
 0x277   :  { %v246_v9 = vcvt.f32.s32 %v245_v7 }
 0x279   :  { %v249_v10 = vadd.s32 %v248_v8, %v246_v9 }
 0x27b   :  { %336 = vst.msk [vmem:[%s565_s3 + $0x8] sm:$0xff] %vm334_vm4, %v249_v10 }
 0x27e   :  { %v259_v12 = vpop.xlane.xlu0 %258 }
 0x27f   :  { %v260_v14 = vcvt.f32.s32 %v259_v12 }
 0x281   :  { %v263_v15 = vadd.s32 %v262_v13, %v260_v14 }
 0x283   :  { %337 = vst.msk [vmem:[%s565_s3 + $0x10] sm:$0xff] %vm334_vm4, %v263_v15 }
 0x286   :  { %v273_v17 = vpop.xlane.xlu1 %272 }
 0x287   :  { %v274_v19 = vcvt.f32.s32 %v273_v17 }
 0x289   :  { %v277_v20 = vadd.s32 %v276_v18, %v274_v19 }
 0x28b   :  { %338 = vst.msk [vmem:[%s565_s3 + $0x18] sm:$0xff] %vm334_vm4, %v277_v20 }
 0x294   :  { %v287_v22 = vpop.xlane.xlu2 %286 }
 0x295   :  { %v288_v24 = vcvt.f32.s32 %v287_v22 }
 0x297   :  { %v291_v25 = vadd.s32 %v290_v23, %v288_v24 }
 0x299   :  { %339 = vst.msk [vmem:[%s565_s3 + $0x20] sm:$0xff] %vm334_vm4, %v291_v25 }
 0x29c   :  { %v301_v27 = vpop.xlane.xlu0 %300 }
 0x29d   :  { %v302_v29 = vcvt.f32.s32 %v301_v27 }
 0x29f   :  { %v305_v30 = vadd.s32 %v304_v28, %v302_v29 }
 0x2a1   :  { %340 = vst.msk [vmem:[%s565_s3 + $0x28] sm:$0xff] %vm334_vm4, %v305_v30 }
 0x2a4   :  { %v315_v32 = vpop.xlane.xlu1 %314 }
 0x2a5   :  { %v316_v34 = vcvt.f32.s32 %v315_v32 }
 0x2a7   :  { %v319_v35 = vadd.s32 %v318_v33, %v316_v34 }
 0x2a9   :  { %341 = vst.msk [vmem:[%s565_s3 + $0x30] sm:$0xff] %vm334_vm4, %v319_v35 }
 0x2ac   :  { %v329_v37 = vpop.xlane.xlu2 %328 }
 0x2ad   :  { %v330_v40 = vcvt.f32.s32 %v329_v37 }
 0x2af   :  { %v333_v41 = vadd.s32 %v332_v38, %v330_v40 }
 0x2b1   :  { %342 = vst.msk [vmem:[%s565_s3 + $0x38] sm:$0xff] %vm334_vm4, %v333_v41 }

</bundles_post_ra>
